<compile_context>
chip_gen: v7x
topology: tpu7x:2x2x1
jax: 0.10.0
libtpu: 0.0.40
codegen_flags: <defaults>
</compile_context>

<pallas_src>
import functools

import jax
import jax.numpy as jnp
from jax.experimental import pallas as pl
from jax.experimental.pallas import tpu as pltpu

_CORE_PARALLEL = getattr(pltpu, "CORE_PARALLEL", None)
_DEFAULT_SEMANTICS = []  # memoized dimension_semantics choice


def _ln_math(x, g, b, eps, out_dtype):
    """LayerNorm math on one f32 block; matches the PyTorch module exactly:
        mean = x.mean(-1); std = x.std(-1)      # torch.std -> Bessel (H-1)
        out  = a_2 * (x - mean) / (std + eps) + b_2
    NOTE: eps is added to std (not var) and the variance is *unbiased*.  Both
    intentionally differ from standard nn.LayerNorm -- do not "fix".
    """
    h = x.shape[-1]
    # Fused single sweep: sum and sum-of-squares together.
    s = jnp.sum(x, axis=-1, keepdims=True)
    ss = jnp.sum(x * x, axis=-1, keepdims=True)
    mean = s * jnp.float32(1.0 / h)

    denom = max(h - 1, 1)  # guard H == 1 (torch.std would be NaN there)
    var = (ss - jnp.float32(h) * mean * mean) * jnp.float32(1.0 / denom)
    var = jnp.maximum(var, jnp.float32(0.0))  # clamp cancellation negatives
    std = jnp.sqrt(var)

    # Reciprocal on the EUP (separate VLIW slot) instead of a full-tile VPU
    # divide; two Newton steps on the tiny (rows, 1) tensor restore ~f32
    # accuracy at negligible cost.
    d = std + jnp.float32(eps)
    inv = pl.reciprocal(d, approx=True)
    inv = inv * (jnp.float32(2.0) - d * inv)
    inv = inv * (jnp.float32(2.0) - d * inv)

    return (g * (x - mean) * inv + b).astype(out_dtype)


def _layernorm_kernel(x_ref, g_ref, b_ref, o_ref, *, eps):
    x = x_ref[...].astype(jnp.float32)
    o_ref[...] = _ln_math(x, g_ref[...].astype(jnp.float32),
                          b_ref[...].astype(jnp.float32), eps, o_ref.dtype)


def _add_layernorm_kernel(x_ref, r_ref, g_ref, b_ref, o_ref, *, eps):
    """Fused residual-add + LayerNorm: LN(x + residual)."""
    x = x_ref[...].astype(jnp.float32) + r_ref[...].astype(jnp.float32)
    o_ref[...] = _ln_math(x, g_ref[...].astype(jnp.float32),
                          b_ref[...].astype(jnp.float32), eps, o_ref.dtype)


def _choose_tile_rows(rows, h, in_itemsize):
    """Pick a row tile sized by the f32 working set of one block.

    The kernel body upcasts everything to f32, so the live VMEM per block is
    ~tile_rows*H*4 regardless of the input dtype; sizing by the input
    itemsize would overshoot for bf16/int8.  Blocks target ~2 MiB (4 MiB for
    small H) -- large enough to amortize the ~0.35 us per-grid-step overhead
    and sit near HBM roofline, small enough that double-buffered in+out plus
    f32 temporaries stay under the explicit vmem_limit_bytes below on all of
    v5e / v6e / v7x.
    """
    sublane = 8 if in_itemsize >= 4 else max(8, 32 // in_itemsize)
    f32_bytes = 4
    if h <= 512:
        target_bytes, cap = 4 * 1024 * 1024, 2048
    else:
        target_bytes, cap = 2 * 1024 * 1024, 1024
    tr = max(sublane, target_bytes // max(1, h * f32_bytes))
    tr = min(tr, cap)
    tr = max((tr // sublane) * sublane, sublane)
    rows_up = ((rows + sublane - 1) // sublane) * sublane
    return min(tr, max(rows_up, sublane))


def _vmem_limit_bytes(tile_rows, h, n_tensor_in, in_itemsize, out_itemsize):
    """Explicit scoped-VMEM budget: double-buffered in/out + f32 temporaries."""
    blk = tile_rows * h
    dma = 2 * n_tensor_in * blk * in_itemsize + 2 * blk * out_itemsize
    temps = 6 * blk * 4  # f32 working set inside the body (generous)
    est = int(dma + temps) + (1 << 20)
    # >= 32 MiB (above v5e's 16 MiB scoped default), <= 48 MiB (headroom on
    # v7x's 64 MiB physical VMEM per TC).
    return int(min(max(est, 32 * 1024 * 1024), 48 * 1024 * 1024))


def _make_cost_estimate(rows, h, n_tensor_in, in_itemsize, out_itemsize,
                        param_itemsize):
    """Advisory cost estimate so XLA can overlap this mem-bound call."""
    try:
        bytes_accessed = (rows * h * (n_tensor_in * in_itemsize + out_itemsize)
                          + 2 * h * param_itemsize)
        return pl.CostEstimate(
            flops=int((6 + 2 * n_tensor_in) * rows * h),
            transcendentals=int(2 * rows),
            bytes_accessed=int(bytes_accessed),
        )
    except Exception:
        return None


def layer_norm(x, a_2, b_2, residual=None, eps=1e-6, tile_rows=None,
               out_dtype=None, dimension_semantics=None):
    """LayerNorm over the last axis of x (any leading shape).

    residual: optional tensor of the same shape; the kernel computes
              LN(x + residual) in one HBM pass (SAoA/GAoA residual pattern).
    out_dtype: optional output dtype (e.g. bf16 for the consumer matmul).
    """
    orig_shape = x.shape
    h = orig_shape[-1]
    out_dtype = jnp.dtype(x.dtype if out_dtype is None else out_dtype)

    x2 = x.reshape(-1, h)
    rows = x2.shape[0]
    operands = [x2]
    if residual is not None:
        assert residual.shape == orig_shape
        operands.append(residual.reshape(-1, h))
    n_tensor_in = len(operands)

    g2 = a_2.reshape(1, h)
    bb2 = b_2.reshape(1, h)

    in_itemsize = jnp.dtype(x.dtype).itemsize
    if tile_rows is None:
        tile_rows = _choose_tile_rows(rows, h, in_itemsize)
    if dimension_semantics is None:
        dimension_semantics = _default_semantics()

    # No wrapper pad: grid = cdiv(rows, tile) and the partial last block is
    # masked by Pallas on writeback.
    grid = (pl.cdiv(rows, tile_rows),)

    data_spec = pl.BlockSpec((tile_rows, h), lambda i: (i, 0))
    param_spec = pl.BlockSpec((1, h), lambda i: (0, 0))
    kernel = _add_layernorm_kernel if residual is not None else _layernorm_kernel

    out = pl.pallas_call(
        functools.partial(kernel, eps=eps),
        out_shape=jax.ShapeDtypeStruct((rows, h), out_dtype),
        grid_spec=pltpu.PrefetchScalarGridSpec(
            num_scalar_prefetch=0,
            grid=grid,
            in_specs=[data_spec] * n_tensor_in + [param_spec, param_spec],
            out_specs=pl.BlockSpec((tile_rows, h), lambda i: (i, 0)),
        ),
        compiler_params=pltpu.CompilerParams(
            dimension_semantics=dimension_semantics,
            vmem_limit_bytes=_vmem_limit_bytes(
                tile_rows, h, n_tensor_in, in_itemsize, out_dtype.itemsize),
        ),
        cost_estimate=_make_cost_estimate(
            rows, h, n_tensor_in, in_itemsize, out_dtype.itemsize,
            jnp.dtype(a_2.dtype).itemsize),
    )(*operands, g2, bb2)

    return out.reshape(orig_shape)


def _layer_norm_ref(x, g, b, eps):
    """Pure-JAX reference mirroring the PyTorch forward exactly."""
    h = x.shape[-1]
    mean = jnp.mean(x, axis=-1, keepdims=True)
    std = jnp.sqrt(jnp.sum((x - mean) ** 2, axis=-1, keepdims=True) / (h - 1))
    return g * (x - mean) / (std + eps) + b


def _default_semantics():
    """Pick the row-axis grid semantics once: prefer CORE_PARALLEL (v7x has
    2 TensorCores per chip -> up to ~2x for this HBM-bound kernel), verified
    against the JAX reference; otherwise fall back to 'parallel'."""
    if _DEFAULT_SEMANTICS:
        return _DEFAULT_SEMANTICS[0]
    candidates = []
    if _CORE_PARALLEL is not None:
        candidates.append((_CORE_PARALLEL,))
    candidates.append(("parallel",))
    chosen = ("arbitrary",)
    xp = jax.random.normal(jax.random.PRNGKey(123), (64, 256), dtype=jnp.float32)
    gp = jnp.ones((256,), jnp.float32)
    bp = jnp.zeros((256,), jnp.float32)
    ref = _layer_norm_ref(xp, gp, bp, 1e-6)
    for sem in candidates:
        try:
            yp = jax.block_until_ready(
                layer_norm(xp, gp, bp, eps=1e-6, tile_rows=8,
                           dimension_semantics=sem))
            if bool(jnp.allclose(yp, ref, atol=1e-4, rtol=1e-4)):
                chosen = sem
                break
        except Exception:
            continue
    _DEFAULT_SEMANTICS.append(chosen)
    return chosen


if __name__ == "__main__":
    key = jax.random.PRNGKey(0)
    k1, k2, k3, k4 = jax.random.split(key, 4)

    # Small shapes consistent with the module; hidden is a multiple of 128 so
    # output stores are lane-dense (real model: hidden=1024, 2*embed=2048).
    batch, seq, hidden = 2, 8, 256
    x = jax.random.normal(k1, (batch, seq, hidden), dtype=jnp.float32)
    a_2 = jnp.ones((hidden,), dtype=jnp.float32)   # nn.Parameter(torch.ones)
    b_2 = jnp.zeros((hidden,), dtype=jnp.float32)  # nn.Parameter(torch.zeros)

    # (1) Plain LayerNorm as used inside every SAoA / GAoA block.
    y = jax.block_until_ready(layer_norm(x, a_2, b_2, eps=1e-6))
    y_ref = _layer_norm_ref(x, a_2, b_2, 1e-6)
    assert y.shape == x.shape
    assert jnp.allclose(y, y_ref, atol=1e-4, rtol=1e-4)

    # (2) Fused residual-add + LayerNorm: the norm1(x + dropout(aoa(x)))
    #     pattern (dropout is identity at inference).
    sub = jax.random.normal(k2, (batch, seq, hidden), dtype=jnp.float32)
    y2 = jax.block_until_ready(layer_norm(x, a_2, b_2, residual=sub, eps=1e-6))
    y2_ref = _layer_norm_ref(x + sub, a_2, b_2, 1e-6)
    assert jnp.allclose(y2, y2_ref, atol=1e-4, rtol=1e-4)

    # (3) Final LayerNorm(2*embed) over the fused feature in MCAoAN.forward.
    fused = jax.random.normal(k3, (batch, 2 * hidden), dtype=jnp.float32)
    a_f = jnp.ones((2 * hidden,), dtype=jnp.float32)
    b_f = jnp.zeros((2 * hidden,), dtype=jnp.float32)
    z = jax.block_until_ready(layer_norm(fused, a_f, b_f, eps=1e-6))
    z_ref = _layer_norm_ref(fused, a_f, b_f, 1e-6)
    assert z.shape == fused.shape
    assert jnp.allclose(z, z_ref, atol=1e-4, rtol=1e-4)

    # (4) Partial last grid block: rows (15) not a multiple of tile_rows (8);
    #     verifies Pallas masks the writeback of padded rows.
    xr = jax.random.normal(k4, (3, 5, hidden), dtype=jnp.float32)
    yr = jax.block_until_ready(layer_norm(xr, a_2, b_2, eps=1e-6, tile_rows=8))
    yr_ref = _layer_norm_ref(xr, a_2, b_2, 1e-6)
    assert jnp.allclose(yr, yr_ref, atol=1e-4, rtol=1e-4)

    # (5) Output already cast to the consumer's matmul dtype.
    yb = jax.block_until_ready(
        layer_norm(x, a_2, b_2, eps=1e-6, out_dtype=jnp.bfloat16))
    assert yb.dtype == jnp.bfloat16
    assert jnp.allclose(yb.astype(jnp.float32), y_ref, atol=5e-2, rtol=2e-2)

    print("KERNEL_OK")
</pallas_src>

<mosaic_0001>
module attributes {stable_mosaic.version = 11 : i64} {
  func.func @_layernorm_kernel(%arg0: i32, %arg1: memref<8x256xf32, #tpu.memory_space<vmem>>, %arg2: memref<1x256xf32, #tpu.memory_space<vmem>>, %arg3: memref<1x256xf32, #tpu.memory_space<vmem>>, %arg4: memref<8x256xf32, #tpu.memory_space<vmem>>) attributes {dimension_semantics = [#tpu.dimension_semantics<core_parallel>], iteration_bounds = array<i64: 8>, scalar_prefetch = 0 : i64, scratch_operands = 0 : i64, tpu.core_type = #tpu.core_type<tc>, window_params = [{transform_indices = @transform_0, window_bounds = array<i64: 8, 256>}, {pipeline_mode = #tpu.pipeline_mode<synchronous>, transform_indices = @transform_1, window_bounds = array<i64: 1, 256>}, {pipeline_mode = #tpu.pipeline_mode<synchronous>, transform_indices = @transform_2, window_bounds = array<i64: 1, 256>}, {transform_indices = @transform_3, window_bounds = array<i64: 8, 256>}]} {
    %c0 = arith.constant 0 : index
    %c0_0 = arith.constant 0 : index
    %0 = vector.load %arg1[%c0, %c0_0] : memref<8x256xf32, #tpu.memory_space<vmem>>, vector<8x256xf32>
    %c0_1 = arith.constant 0 : index
    %c0_2 = arith.constant 0 : index
    %1 = vector.load %arg2[%c0_1, %c0_2] : memref<1x256xf32, #tpu.memory_space<vmem>>, vector<1x256xf32>
    %c0_3 = arith.constant 0 : index
    %c0_4 = arith.constant 0 : index
    %2 = vector.load %arg3[%c0_3, %c0_4] : memref<1x256xf32, #tpu.memory_space<vmem>>, vector<1x256xf32>
    %cst = arith.constant dense<0.000000e+00> : vector<8xf32>
    %3 = vector.multi_reduction <add>, %0, %cst [1] : vector<8x256xf32> to vector<8xf32>
    %4 = vector.shape_cast %3 : vector<8xf32> to vector<8x1xf32>
    %5 = arith.mulf %0, %0 : vector<8x256xf32>
    %cst_5 = arith.constant dense<0.000000e+00> : vector<8xf32>
    %6 = vector.multi_reduction <add>, %5, %cst_5 [1] : vector<8x256xf32> to vector<8xf32>
    %7 = vector.shape_cast %6 : vector<8xf32> to vector<8x1xf32>
    %cst_6 = arith.constant 3.906250e-03 : f32
    %8 = vector.broadcast %cst_6 : f32 to vector<8x1xf32>
    %9 = arith.mulf %4, %8 : vector<8x1xf32>
    %cst_7 = arith.constant 2.560000e+02 : f32
    %10 = vector.broadcast %cst_7 : f32 to vector<8x1xf32>
    %11 = arith.mulf %10, %9 : vector<8x1xf32>
    %12 = arith.mulf %11, %9 : vector<8x1xf32>
    %13 = arith.subf %7, %12 : vector<8x1xf32>
    %cst_8 = arith.constant 0.00392156886 : f32
    %14 = vector.broadcast %cst_8 : f32 to vector<8x1xf32>
    %15 = arith.mulf %13, %14 : vector<8x1xf32>
    %cst_9 = arith.constant 0.000000e+00 : f32
    %16 = vector.broadcast %cst_9 : f32 to vector<8x1xf32>
    %17 = arith.maximumf %15, %16 : vector<8x1xf32>
    %18 = math.sqrt %17 : vector<8x1xf32>
    %cst_10 = arith.constant 9.99999997E-7 : f32
    %19 = vector.broadcast %cst_10 : f32 to vector<8x1xf32>
    %20 = arith.addf %18, %19 : vector<8x1xf32>
    %21 = tpu.reciprocal %20 {approx = true} : vector<8x1xf32> -> vector<8x1xf32>
    %22 = arith.mulf %20, %21 : vector<8x1xf32>
    %cst_11 = arith.constant 2.000000e+00 : f32
    %23 = vector.broadcast %cst_11 : f32 to vector<8x1xf32>
    %24 = arith.subf %23, %22 : vector<8x1xf32>
    %25 = arith.mulf %21, %24 : vector<8x1xf32>
    %26 = arith.mulf %20, %25 : vector<8x1xf32>
    %cst_12 = arith.constant 2.000000e+00 : f32
    %27 = vector.broadcast %cst_12 : f32 to vector<8x1xf32>
    %28 = arith.subf %27, %26 : vector<8x1xf32>
    %29 = arith.mulf %25, %28 : vector<8x1xf32>
    %30 = vector.broadcast %9 : vector<8x1xf32> to vector<8x256xf32>
    %31 = arith.subf %0, %30 : vector<8x256xf32>
    %32 = vector.broadcast %1 : vector<1x256xf32> to vector<8x256xf32>
    %33 = arith.mulf %32, %31 : vector<8x256xf32>
    %34 = vector.broadcast %29 : vector<8x1xf32> to vector<8x256xf32>
    %35 = arith.mulf %33, %34 : vector<8x256xf32>
    %36 = vector.broadcast %2 : vector<1x256xf32> to vector<8x256xf32>
    %37 = arith.addf %35, %36 : vector<8x256xf32>
    %c0_13 = arith.constant 0 : index
    %c0_14 = arith.constant 0 : index
    %38 = vector.load %arg4[%c0_13, %c0_14] : memref<8x256xf32, #tpu.memory_space<vmem>>, vector<8x256xf32>
    tpu.vector_store %arg4[%c0_13, %c0_14], %37 {strides = array<i32>} : memref<8x256xf32, #tpu.memory_space<vmem>>, vector<8x256xf32>,
    return
  }
  func.func @transform_0(%arg0: i32) -> (i32, i32) {
    %c0_i32 = arith.constant 0 : i32
    %c0_i32_0 = arith.constant 0 : i32
    return %arg0, %c0_i32 : i32, i32
  }
  func.func @transform_1(%arg0: i32) -> (i32, i32) {
    %c0_i32 = arith.constant 0 : i32
    %c0_i32_0 = arith.constant 0 : i32
    %c0_i32_1 = arith.constant 0 : i32
    return %c0_i32, %c0_i32_0 : i32, i32
  }
  func.func @transform_2(%arg0: i32) -> (i32, i32) {
    %c0_i32 = arith.constant 0 : i32
    %c0_i32_0 = arith.constant 0 : i32
    %c0_i32_1 = arith.constant 0 : i32
    return %c0_i32, %c0_i32_0 : i32, i32
  }
  func.func @transform_3(%arg0: i32) -> (i32, i32) {
    %c0_i32 = arith.constant 0 : i32
    %c0_i32_0 = arith.constant 0 : i32
    return %arg0, %c0_i32 : i32, i32
  }
}

module attributes {stable_mosaic.version = 11 : i64} {
  func.func @_layernorm_kernel(%arg0: i32, %arg1: memref<8x256xf32, #tpu.memory_space<vmem>>, %arg2: memref<1x256xf32, #tpu.memory_space<vmem>>, %arg3: memref<1x256xf32, #tpu.memory_space<vmem>>, %arg4: memref<8x256xf32, #tpu.memory_space<vmem>>) attributes {dimension_semantics = [#tpu.dimension_semantics<parallel>], iteration_bounds = array<i64: 8>, scalar_prefetch = 0 : i64, scratch_operands = 0 : i64, tpu.core_type = #tpu.core_type<tc>, window_params = [{transform_indices = @transform_0, window_bounds = array<i64: 8, 256>}, {pipeline_mode = #tpu.pipeline_mode<synchronous>, transform_indices = @transform_1, window_bounds = array<i64: 1, 256>}, {pipeline_mode = #tpu.pipeline_mode<synchronous>, transform_indices = @transform_2, window_bounds = array<i64: 1, 256>}, {transform_indices = @transform_3, window_bounds = array<i64: 8, 256>}]} {
    %c0 = arith.constant 0 : index
    %c0_0 = arith.constant 0 : index
    %0 = vector.load %arg1[%c0, %c0_0] : memref<8x256xf32, #tpu.memory_space<vmem>>, vector<8x256xf32>
    %c0_1 = arith.constant 0 : index
    %c0_2 = arith.constant 0 : index
    %1 = vector.load %arg2[%c0_1, %c0_2] : memref<1x256xf32, #tpu.memory_space<vmem>>, vector<1x256xf32>
    %c0_3 = arith.constant 0 : index
    %c0_4 = arith.constant 0 : index
    %2 = vector.load %arg3[%c0_3, %c0_4] : memref<1x256xf32, #tpu.memory_space<vmem>>, vector<1x256xf32>
    %cst = arith.constant dense<0.000000e+00> : vector<8xf32>
    %3 = vector.multi_reduction <add>, %0, %cst [1] : vector<8x256xf32> to vector<8xf32>
    %4 = vector.shape_cast %3 : vector<8xf32> to vector<8x1xf32>
    %5 = arith.mulf %0, %0 : vector<8x256xf32>
    %cst_5 = arith.constant dense<0.000000e+00> : vector<8xf32>
    %6 = vector.multi_reduction <add>, %5, %cst_5 [1] : vector<8x256xf32> to vector<8xf32>
    %7 = vector.shape_cast %6 : vector<8xf32> to vector<8x1xf32>
    %cst_6 = arith.constant 3.906250e-03 : f32
    %8 = vector.broadcast %cst_6 : f32 to vector<8x1xf32>
    %9 = arith.mulf %4, %8 : vector<8x1xf32>
    %cst_7 = arith.constant 2.560000e+02 : f32
    %10 = vector.broadcast %cst_7 : f32 to vector<8x1xf32>
    %11 = arith.mulf %10, %9 : vector<8x1xf32>
    %12 = arith.mulf %11, %9 : vector<8x1xf32>
    %13 = arith.subf %7, %12 : vector<8x1xf32>
    %cst_8 = arith.constant 0.00392156886 : f32
    %14 = vector.broadcast %cst_8 : f32 to vector<8x1xf32>
    %15 = arith.mulf %13, %14 : vector<8x1xf32>
    %cst_9 = arith.constant 0.000000e+00 : f32
    %16 = vector.broadcast %cst_9 : f32 to vector<8x1xf32>
    %17 = arith.maximumf %15, %16 : vector<8x1xf32>
    %18 = math.sqrt %17 : vector<8x1xf32>
    %cst_10 = arith.constant 9.99999997E-7 : f32
    %19 = vector.broadcast %cst_10 : f32 to vector<8x1xf32>
    %20 = arith.addf %18, %19 : vector<8x1xf32>
    %21 = tpu.reciprocal %20 {approx = true} : vector<8x1xf32> -> vector<8x1xf32>
    %22 = arith.mulf %20, %21 : vector<8x1xf32>
    %cst_11 = arith.constant 2.000000e+00 : f32
    %23 = vector.broadcast %cst_11 : f32 to vector<8x1xf32>
    %24 = arith.subf %23, %22 : vector<8x1xf32>
    %25 = arith.mulf %21, %24 : vector<8x1xf32>
    %26 = arith.mulf %20, %25 : vector<8x1xf32>
    %cst_12 = arith.constant 2.000000e+00 : f32
    %27 = vector.broadcast %cst_12 : f32 to vector<8x1xf32>
    %28 = arith.subf %27, %26 : vector<8x1xf32>
    %29 = arith.mulf %25, %28 : vector<8x1xf32>
    %30 = vector.broadcast %9 : vector<8x1xf32> to vector<8x256xf32>
    %31 = arith.subf %0, %30 : vector<8x256xf32>
    %32 = vector.broadcast %1 : vector<1x256xf32> to vector<8x256xf32>
    %33 = arith.mulf %32, %31 : vector<8x256xf32>
    %34 = vector.broadcast %29 : vector<8x1xf32> to vector<8x256xf32>
    %35 = arith.mulf %33, %34 : vector<8x256xf32>
    %36 = vector.broadcast %2 : vector<1x256xf32> to vector<8x256xf32>
    %37 = arith.addf %35, %36 : vector<8x256xf32>
    %c0_13 = arith.constant 0 : index
    %c0_14 = arith.constant 0 : index
    %38 = vector.load %arg4[%c0_13, %c0_14] : memref<8x256xf32, #tpu.memory_space<vmem>>, vector<8x256xf32>
    tpu.vector_store %arg4[%c0_13, %c0_14], %37 {strides = array<i32>} : memref<8x256xf32, #tpu.memory_space<vmem>>, vector<8x256xf32>,
    return
  }
  func.func @transform_0(%arg0: i32) -> (i32, i32) {
    %c0_i32 = arith.constant 0 : i32
    %c0_i32_0 = arith.constant 0 : i32
    return %arg0, %c0_i32 : i32, i32
  }
  func.func @transform_1(%arg0: i32) -> (i32, i32) {
    %c0_i32 = arith.constant 0 : i32
    %c0_i32_0 = arith.constant 0 : i32
    %c0_i32_1 = arith.constant 0 : i32
    return %c0_i32, %c0_i32_0 : i32, i32
  }
  func.func @transform_2(%arg0: i32) -> (i32, i32) {
    %c0_i32 = arith.constant 0 : i32
    %c0_i32_0 = arith.constant 0 : i32
    %c0_i32_1 = arith.constant 0 : i32
    return %c0_i32, %c0_i32_0 : i32, i32
  }
  func.func @transform_3(%arg0: i32) -> (i32, i32) {
    %c0_i32 = arith.constant 0 : i32
    %c0_i32_0 = arith.constant 0 : i32
    return %arg0, %c0_i32 : i32, i32
  }
}

module attributes {stable_mosaic.version = 11 : i64} {
  func.func @_layernorm_kernel(%arg0: i32, %arg1: memref<16x256xf32, #tpu.memory_space<vmem>>, %arg2: memref<1x256xf32, #tpu.memory_space<vmem>>, %arg3: memref<1x256xf32, #tpu.memory_space<vmem>>, %arg4: memref<16x256xf32, #tpu.memory_space<vmem>>) attributes {dimension_semantics = [#tpu.dimension_semantics<arbitrary>], iteration_bounds = array<i64: 1>, scalar_prefetch = 0 : i64, scratch_operands = 0 : i64, tpu.core_type = #tpu.core_type<tc>, window_params = [{transform_indices = @transform_0, window_bounds = array<i64: 16, 256>}, {pipeline_mode = #tpu.pipeline_mode<synchronous>, transform_indices = @transform_1, window_bounds = array<i64: 1, 256>}, {pipeline_mode = #tpu.pipeline_mode<synchronous>, transform_indices = @transform_2, window_bounds = array<i64: 1, 256>}, {transform_indices = @transform_3, window_bounds = array<i64: 16, 256>}]} {
    %c0 = arith.constant 0 : index
    %c0_0 = arith.constant 0 : index
    %0 = vector.load %arg1[%c0, %c0_0] : memref<16x256xf32, #tpu.memory_space<vmem>>, vector<16x256xf32>
    %c0_1 = arith.constant 0 : index
    %c0_2 = arith.constant 0 : index
    %1 = vector.load %arg2[%c0_1, %c0_2] : memref<1x256xf32, #tpu.memory_space<vmem>>, vector<1x256xf32>
    %c0_3 = arith.constant 0 : index
    %c0_4 = arith.constant 0 : index
    %2 = vector.load %arg3[%c0_3, %c0_4] : memref<1x256xf32, #tpu.memory_space<vmem>>, vector<1x256xf32>
    %cst = arith.constant dense<0.000000e+00> : vector<16xf32>
    %3 = vector.multi_reduction <add>, %0, %cst [1] : vector<16x256xf32> to vector<16xf32>
    %4 = vector.shape_cast %3 : vector<16xf32> to vector<16x1xf32>
    %5 = arith.mulf %0, %0 : vector<16x256xf32>
    %cst_5 = arith.constant dense<0.000000e+00> : vector<16xf32>
    %6 = vector.multi_reduction <add>, %5, %cst_5 [1] : vector<16x256xf32> to vector<16xf32>
    %7 = vector.shape_cast %6 : vector<16xf32> to vector<16x1xf32>
    %cst_6 = arith.constant 3.906250e-03 : f32
    %8 = vector.broadcast %cst_6 : f32 to vector<16x1xf32>
    %9 = arith.mulf %4, %8 : vector<16x1xf32>
    %cst_7 = arith.constant 2.560000e+02 : f32
    %10 = vector.broadcast %cst_7 : f32 to vector<16x1xf32>
    %11 = arith.mulf %10, %9 : vector<16x1xf32>
    %12 = arith.mulf %11, %9 : vector<16x1xf32>
    %13 = arith.subf %7, %12 : vector<16x1xf32>
    %cst_8 = arith.constant 0.00392156886 : f32
    %14 = vector.broadcast %cst_8 : f32 to vector<16x1xf32>
    %15 = arith.mulf %13, %14 : vector<16x1xf32>
    %cst_9 = arith.constant 0.000000e+00 : f32
    %16 = vector.broadcast %cst_9 : f32 to vector<16x1xf32>
    %17 = arith.maximumf %15, %16 : vector<16x1xf32>
    %18 = math.sqrt %17 : vector<16x1xf32>
    %cst_10 = arith.constant 9.99999997E-7 : f32
    %19 = vector.broadcast %cst_10 : f32 to vector<16x1xf32>
    %20 = arith.addf %18, %19 : vector<16x1xf32>
    %21 = tpu.reciprocal %20 {approx = true} : vector<16x1xf32> -> vector<16x1xf32>
    %22 = arith.mulf %20, %21 : vector<16x1xf32>
    %cst_11 = arith.constant 2.000000e+00 : f32
    %23 = vector.broadcast %cst_11 : f32 to vector<16x1xf32>
    %24 = arith.subf %23, %22 : vector<16x1xf32>
    %25 = arith.mulf %21, %24 : vector<16x1xf32>
    %26 = arith.mulf %20, %25 : vector<16x1xf32>
    %cst_12 = arith.constant 2.000000e+00 : f32
    %27 = vector.broadcast %cst_12 : f32 to vector<16x1xf32>
    %28 = arith.subf %27, %26 : vector<16x1xf32>
    %29 = arith.mulf %25, %28 : vector<16x1xf32>
    %30 = vector.broadcast %9 : vector<16x1xf32> to vector<16x256xf32>
    %31 = arith.subf %0, %30 : vector<16x256xf32>
    %32 = vector.broadcast %1 : vector<1x256xf32> to vector<16x256xf32>
    %33 = arith.mulf %32, %31 : vector<16x256xf32>
    %34 = vector.broadcast %29 : vector<16x1xf32> to vector<16x256xf32>
    %35 = arith.mulf %33, %34 : vector<16x256xf32>
    %36 = vector.broadcast %2 : vector<1x256xf32> to vector<16x256xf32>
    %37 = arith.addf %35, %36 : vector<16x256xf32>
    %c0_13 = arith.constant 0 : index
    %c0_14 = arith.constant 0 : index
    %38 = vector.load %arg4[%c0_13, %c0_14] : memref<16x256xf32, #tpu.memory_space<vmem>>, vector<16x256xf32>
    tpu.vector_store %arg4[%c0_13, %c0_14], %37 {strides = array<i32>} : memref<16x256xf32, #tpu.memory_space<vmem>>, vector<16x256xf32>,
    return
  }
  func.func @transform_0(%arg0: i32) -> (i32, i32) {
    %c0_i32 = arith.constant 0 : i32
    %c0_i32_0 = arith.constant 0 : i32
    return %arg0, %c0_i32 : i32, i32
  }
  func.func @transform_1(%arg0: i32) -> (i32, i32) {
    %c0_i32 = arith.constant 0 : i32
    %c0_i32_0 = arith.constant 0 : i32
    %c0_i32_1 = arith.constant 0 : i32
    return %c0_i32, %c0_i32_0 : i32, i32
  }
  func.func @transform_2(%arg0: i32) -> (i32, i32) {
    %c0_i32 = arith.constant 0 : i32
    %c0_i32_0 = arith.constant 0 : i32
    %c0_i32_1 = arith.constant 0 : i32
    return %c0_i32, %c0_i32_0 : i32, i32
  }
  func.func @transform_3(%arg0: i32) -> (i32, i32) {
    %c0_i32 = arith.constant 0 : i32
    %c0_i32_0 = arith.constant 0 : i32
    return %arg0, %c0_i32 : i32, i32
  }
}

</mosaic_0001>

<bundles_post_ra>
// kernel: tpu_custom_call.1
= control target key start
LH: loop header
LB: loop body
LE: loop exit
PB: predicated region body
PF: predicated region fallthrough
CT: control target
= control target key end

     0   :  { %8 = vsyncpa [#allocation3], 0  ;;  %s692_s0 = inlined_call_operand.hbm [shape: f32[64,256], index: 0, kind: input, shape index: {}]   ;;  %s693_s1 = inlined_call_operand.vmem [shape: f32[1,256], index: 1, kind: input, shape index: {}]   ;;  %s694_s2 = inlined_call_operand.vmem [shape: f32[1,256], index: 2, kind: input, shape index: {}]   ;;  %s695_s3 = inlined_call_operand.hbm [shape: f32[64,256], index: 3, kind: output, shape index: {}]  }
   0x1   :  { %10 = vsyncpa [#allocation3 + $0x1], 0 }
   0x2   :  { %11 = vsyncpa [#allocation4], 0 }
   0x3   :  { %13 = vsyncpa [#allocation4 + $0x1], 0  ;;  %s523_s12 = smov 0   ;;  %s525_s13 = smov 0  }
   0x4   :  { %s527_s14 = smov 0   ;;  %s529_s15 = smov 0  }
   0x5 LB: > { %s544_s16 = sadd.s32 4294967295, %s499_s15   ;;  %s337_s17 = sadd.s32 4294967294, %s499_s15   ;;  %s499_s15 = sphi %s529_s15, %s709_s15   ;;  %s495_s14 = sphi %s527_s14, %s708_s14   ;;  %s491_s13 = sphi %s525_s13, %s707_s13   ;;  %s487_s12 = sphi %s523_s12, %s706_s12  }
   0x6   : > { %s548_s18 = sadd.s32 1, %s499_s15   ;;  %s26_s19 = sadd.s32 1, %s495_s14 }
   0x7   : > { %s23_s20 = ssub.s32 %s499_s15, %s548_s18  ;;  %p33_p0 = scmp.ne.s32.totalorder %s495_s14, %s491_s13 }
   0x8   : > { %p24_p1 = scmp.eq.s32.totalorder %s23_s20, 0  ;;  %p34_p2 = scmp.eq.s32.totalorder %s499_s15, 0 }
   0x9   : > { %p39_p3 = scmp.ne.s32.totalorder %s491_s13, %s487_s12  ;;  %p40_p4 = scmp.eq.s32.totalorder %s544_s16, 0 }
   0xa   : > { %s560_s21 = scalar_select %p24_p1, %s495_s14, %s26_s19  }
   0xb   : > { %p562_p5 = por %p34_p2, %p33_p0  ;;  %p566_p6 = por %p40_p4, %p39_p3 }
   0xc   : > { %p105_p7 = scmp.eq.s32.totalorder %s544_s16, 7  ;;  %p111_p8 = scmp.eq.s32.totalorder %s337_s17, 7 }
   0xd   : > { %p365_p9 = scmp.lt.s32.totalorder %s499_s15, 8  ;;  %s137_s26 = sand.u32 1, %s495_s14  }
   0xe   : > { %p572_p10 = por %p105_p7, %p33_p0  ;;  %p576_p11 = por %p111_p8, %p39_p3 }
   0xf   : > { %s351_s27 = sshll.u32 %s499_s15, 8  ;;  %s340_s28 = sshll.u32 %s137_s26, 4 }
  0x10   : > { %s699_s24 = scalar_select %p572_p10, 1, 0 }
  0x11   : > { %s700_s25 = scalar_select %p576_p11, 1, 0 }
  0x12   : > { %s585_s4 = scalar_lea.hbm %s692_s0, %s351_s27  ;;  %s141_s5 = scalar_lea.vmem [#allocation2], %s340_s28 }
  0x13   : > { %s149_s6 = sshll.u32 %s141_s5, 4  ;;  %p589_p12 = pnand %p365_p9, %p562_p5  ;;  %s593_s6 = int_to_ptr.vmem [resolvable:$true] %s149_s6 }
  0x14   : > { %s138_s8 = scalar_lea.sflag [#allocation3], %s137_s26  ;;  %s403_s9 = scalar_lea.hbm %s585_s4, 256 }
  0x15   : > { %p404_p1 = scmp.ne.s32.totalorder %s585_s4, %s403_s9  ;;  %p405_p2 = pneg %p589_p12 }
  0x16   : > { %s408_s17 = scalar_lea.hbm %s692_s0, 2048  ;;  %p409_p5 = scmp.lt.u32.totalorder %s585_s4, %s692_s0 }
  0x17   : > { %p406_p3 = pnand %p405_p2, %p404_p1  ;;  %p410_p7 = scmp.lt.u32.totalorder %s408_s17, %s403_s9 }
  0x18   : > { %p412_p9 = scmp.lt.u32.totalorder %s403_s9, %s585_s4 }
  0x19   : > { %p407_p4 = pneg %p406_p3  ;;  %p411_p8 = por %p410_p7, %p409_p5 }
  0x1b   : > { %p413_p13 = por %p412_p9, %p411_p8 }
  0x1d   : > { %p414_p0 = pnand %p413_p13, %p407_p4 }
  0x1f   : > { %417 = shalt.err (!%p414_p0)
}
  0x20   : > { %s418_s22 = scalar_lea.vmem %s593_s6, 256  ;;  %s501_s26 = smov [#allocation2]  }
  0x21   : > { %p419_p1 = scmp.ne.s32.totalorder %s593_s6, %s418_s22  ;;  %s423_s27 = sshll.u32 %s501_s26, 4  ;;  %s424_s27 = int_to_ptr.vmem [resolvable:$false] %s423_s27 }
  0x22   : > { %s425_s28 = scalar_lea.vmem %s424_s27, 512  ;;  %p426_p10 = scmp.lt.s32.totalorder %s593_s6, %s424_s27 }
  0x23   : > { %p421_p3 = pnand %p419_p1, %p405_p2  ;;  %p427_p5 = scmp.lt.s32.totalorder %s425_s28, %s418_s22 }
  0x25   : > { %p422_p11 = pneg %p421_p3  ;;  %p428_p7 = por %p427_p5, %p426_p10 }
  0x27   : > { %p429_p8 = pnand %p428_p7, %p422_p11 }
  0x29   : > { %432 = shalt.err (!%p429_p8)
}
  0x2a   : > { %360 = dma.hbm_to_vmem [thread:$0]  (!%p589_p12), %s585_s4, 256, %s593_s6, %s138_s8  }
  0x2b   : > { %p702_p13 = scmp.lt.s32.totalorder %s499_s15, 9  ;;  %p703_p0 = scmp.ge.s32.totalorder %s499_s15, 1 }
  0x2d   : > { %p155_p2 = pnand %p703_p0, %p702_p13 }
  0x2e   : > { %s627_s29 = sand.u32 (!%p155_p2), 1, %s491_s13  }
  0x2f   : > { %158 = sbr.rel (%p155_p2) target bundleno = 270 (0x10e), region = 32  ;;  %s344_s30 = sshll.u32 (!%p155_p2), %s627_s29, 4 }
  0x30   : > { %s161_s5 = scalar_lea.sflag (!%p155_p2), [#allocation3], %s627_s29  ;;  %s164_s7 = scalar_lea.vmem (!%p155_p2), [#allocation2], %s344_s30 }
  0x36   : > { %478 = dma.done.wait (%p566_p6), %s161_s5, 256  }
  0x37   : > { %480 = vsyncadd (%p566_p6), %s161_s5, 4294967040  ;;  %v187_v0 = vld [vmem:[%s164_s7] sm:$0xff]  ;;  %v188_v1 = vld [vmem:[%s164_s7 + $0x8] sm:$0xff]  ;;  %v223_v20 = vlaneseq  ;;  %s352_s9 = sshll.u32 %s544_s16, 8  ;;  %s186_s10 = scalar_lea.vmem [#allocation5], %s344_s30 }
  0x38   : > { %v191_v2 = vadd.f32 %v188_v1, %v187_v0  ;;  %v194_v3 = vmul.f32 %v187_v0, %v187_v0  ;;  %v195_v4 = vmul.f32 %v188_v1, %v188_v1  ;;  %v189_v25 = vld [vmem:[%s693_s1] sm:$0x3]  ;;  %s267_s11 = sshll.u32 %s186_s10, 4  ;;  %s649_s20 = scalar_lea.hbm %s695_s3, %s352_s9  ;;  %s651_s11 = int_to_ptr.vmem [resolvable:$true] %s267_s11 }
  0x39   : > { %v224_v21 = vshrl.u32 %v223_v20, 7  ;;  %v190_v33 = vld [vmem:[%s694_s2] sm:$0x3]  ;;  %s253_s16 = scalar_lea.sflag [#allocation4], %s627_s29  ;;  %s433_s22 = scalar_lea.vmem %s651_s11, 256 }
  0x3a   : > { %192 = vadd.xlane.f32.xlu0 %v191_v2  ;;  %v196_v5 = vadd.f32 %v195_v4, %v194_v3  ;;  %p434_p6 = scmp.ne.s32.totalorder %s651_s11, %s433_s22  ;;  %p704_p10 = scmp.ne.s32.totalorder %s699_s24, 0 }
  0x3b   : > { %v225_v24 = vsub.s32 0, %v224_v21  ;;  %v229_v26 = vsub.s32 1, %v224_v21  ;;  %s502_s26 = smov [#allocation5]  }
  0x3c   : > { %p435_p11 = pnand %p434_p6, %p704_p10  ;;  %s437_s27 = sshll.u32 %s502_s26, 4  ;;  %s438_s27 = int_to_ptr.vmem [resolvable:$false] %s437_s27 }
  0x3d   : > { %v226_v29 = vrot.slane %v189_v25, %v225_v24  ;;  %v230_v30 = vrot.slane %v189_v25, %v229_v26  ;;  %v241_v36 = vrot.slane %v190_v33, %v225_v24  ;;  %v245_v40 = vrot.slane %v190_v33, %v229_v26  ;;  %s439_s28 = scalar_lea.vmem %s438_s27, 512  ;;  %p440_p4 = scmp.lt.s32.totalorder %s651_s11, %s438_s27 }
  0x3e   : > { %197 = vadd.xlane.f32.xlu0 %v196_v5  ;;  %p436_p12 = pneg %p435_p11  ;;  %p441_p9 = scmp.lt.s32.totalorder %s439_s28, %s433_s22 }
  0x40   : > { %p442_p1 = por %p441_p9, %p440_p4 }
  0x42   : > { %p443_p3 = pnand %p442_p1, %p436_p12 }
  0xc7   : > { %v193_v6 = vpop.xlane.xlu0 %192 }
  0xc8   : > { %v199_v7 = vmul.f32 0.00390625, %v193_v6 }
  0xca   : > { %v200_v8 = vmul.f32 256.0, %v199_v7  ;;  %v220_v31 = vsub.f32 %v187_v0, %v199_v7  ;;  %v221_v32 = vsub.f32 %v188_v1, %v199_v7 }
  0xcb   : > { %v198_v9 = vpop.xlane.xlu0 %197 }
  0xcc   : > { %v201_v10 = vmul.f32 %v200_v8, %v199_v7  ;;  %v233_v37 = vmul.f32 %v226_v29, %v220_v31  ;;  %v234_v38 = vmul.f32 %v230_v30, %v221_v32 }
  0xce   : > { %v202_v11 = vsub.f32 %v198_v9, %v201_v10 }
  0xd0   : > { %v203_v12 = vmul.f32 0.003921569, %v202_v11 }
  0xd2   : > { %v204_v13 = vmax.f32 %v203_v12, 0.0 }
  0xd4   : > { %399 = vrsqrt.f32 %v204_v13  ;;  %vm207_vm0 = vcmp.eq.f32.partialorder %v204_v13, inf  ;;  %v210_v16 = vand.u32 2147483648, %v204_v13  ;;  %vm209_vm1 = vcmp.eq.f32.partialorder %v204_v13, 0.0 }
  0xde   : > { %v400_v14 = vpop.eup %399 }
  0xdf   : > { %v206_v15 = vmul.f32 %v400_v14, %v204_v13 }
  0xe1   : > { %v208_v17 = vsel %vm207_vm0, %v204_v13, %v206_v15 }
  0xe2   : > { %v211_v18 = vsel %vm209_vm1, %v210_v16, %v208_v17 }
  0xe3   : > { %v212_v19 = vadd.f32 1e-06, %v211_v18 }
  0xe5   : > { %401 = vrcp.f32 %v212_v19 }
  0xef   : > { %v402_v22 = vpop.eup %401 }
  0xf0   : > { %v214_v23 = vmul.f32 %v402_v22, %v212_v19 }
  0xf2   : > { %v215_v27 = vsub.f32 2.0, %v214_v23 }
  0xf4   : > { %v216_v28 = vmul.f32 %v402_v22, %v215_v27 }
  0xf6   : > { %v217_v34 = vmul.f32 %v216_v28, %v212_v19 }
  0xf8   : > { %v218_v35 = vsub.f32 2.0, %v217_v34 }
  0xfa   : > { %v219_v39 = vmul.f32 %v218_v35, %v216_v28 }
  0xfc   : > { %v235_v41 = vmul.f32 %v233_v37, %v219_v39  ;;  %v236_v42 = vmul.f32 %v234_v38, %v219_v39 }
  0xfe   : > { %v248_v43 = vadd.f32 %v241_v36, %v235_v41  ;;  %v249_v44 = vadd.f32 %v245_v40, %v236_v42 }
 0x100   : > { %250 = vst [vmem:[%s186_s10] sm:$0xff] %v248_v43  ;;  %251 = vst [vmem:[%s186_s10 + $0x8] sm:$0xff] %v249_v44 }
 0x101   : > { %446 = shalt.err (!%p443_p3)
}
 0x102   : > { %s447_s29 = scalar_lea.hbm %s649_s20, 256  ;;  %s451_s7 = scalar_lea.hbm %s695_s3, 2048 }
 0x103   : > { %p448_p5 = scmp.ne.s32.totalorder %s649_s20, %s447_s29  ;;  %p452_p13 = scmp.lt.u32.totalorder %s649_s20, %s695_s3 }
 0x104   : > { %p453_p0 = scmp.lt.u32.totalorder %s451_s7, %s447_s29  ;;  %p455_p6 = scmp.lt.u32.totalorder %s447_s29, %s649_s20 }
 0x105   : > { %p449_p7 = pnand %p448_p5, %p704_p10 }
 0x106   : > { %p454_p2 = por %p453_p0, %p452_p13 }
 0x107   : > { %p450_p8 = pneg %p449_p7 }
 0x108   : > { %p456_p11 = por %p455_p6, %p454_p2 }
 0x10a   : > { %p457_p12 = pnand %p456_p11, %p450_p8 }
 0x10c   : > { %460 = shalt.err (!%p457_p12)
}
 0x10d   : > { %355 = dma.vmem_to_hbm [thread:$0]  (%p704_p10), %s651_s11, 256, %s649_s20, %s253_s16  }
 0x10e PF: > { %p366_p4 = scmp.ge.s32.totalorder %s499_s15, 2  ;;  %s279_s6 = sand.u32 1, %s487_s12  }
 0x10f   : > { %p705_p9 = scmp.ne.s32.totalorder %s700_s25, 0  ;;  %s280_s8 = scalar_lea.sflag [#allocation4], %s279_s6 }
 0x111   : > { %p362_p1 = pnand %p366_p4, %p705_p9 }
 0x113   : > { %482 = dma.done.wait (!%p362_p1), %s280_s8, 256  }
 0x114   : > { %484 = vsyncadd (!%p362_p1), %s280_s8, 4294967040  ;;  %p16_p3 = scmp.ge.s32.totalorder %s548_s18, 10   ;;  %s706_s12 = smov %s491_s13 }
 0x115   : > { %s707_s13 = smov %s495_s14  ;;  %s708_s14 = smov %s560_s21 }
 0x116   : > { %s709_s15 = smov %s548_s18  ;;  %18 = sbr.rel (!%p16_p3) target bundleno = 5 (0x5), region = 77 }
 0x11d   :  { %285 = vsyncpa [#allocation3], 1 }
 0x11e   :  { %287 = vsyncpa [#allocation3 + $0x1], 1 }
 0x11f   :  { %288 = vsyncpa [#allocation4], 1 }
 0x120   :  { %290 = vsyncpa [#allocation4 + $0x1], 1 }

// kernel: tpu_custom_call.1
= control target key start
LH: loop header
LB: loop body
LE: loop exit
PB: predicated region body
PF: predicated region fallthrough
CT: control target
= control target key end

     0   :  { %8 = vsyncpa [#allocation3], 0  ;;  %s302_s0 = inlined_call_operand.hbm [shape: f32[16,256], index: 0, kind: input, shape index: {}]   ;;  %s303_s1 = inlined_call_operand.vmem [shape: f32[1,256], index: 1, kind: input, shape index: {}]   ;;  %s304_s2 = inlined_call_operand.vmem [shape: f32[1,256], index: 2, kind: input, shape index: {}]   ;;  %s305_s3 = inlined_call_operand.hbm [shape: f32[16,256], index: 3, kind: output, shape index: {}]  }
   0x1   :  { %9 = vsyncpa [#allocation4], 0  ;;  %s212_s12 = smov [#allocation2]   ;;  %s164_s16 = scalar_lea.hbm %s302_s0, 512 }
   0x2   :  { %s15_s13 = sshll.u32 %s212_s12, 4  ;;  %p165_p0 = scmp.ne.s32.totalorder %s302_s0, %s164_s16  ;;  %s16_s13 = int_to_ptr.vmem [resolvable:$true] %s15_s13 }
   0x3   :  { %p168_p1 = scmp.lt.u32.totalorder %s164_s16, %s302_s0 }
   0x5   :  { %p170_p2 = pnand %p168_p1, %p165_p0 }
   0x7   :  { %173 = shalt.err (!%p170_p2)
}
   0x8   :  { %s174_s21 = scalar_lea.vmem %s16_s13, 512  ;;  %p179_p4 = scmp.lt.s32.totalorder %s16_s13, %s16_s13 }
   0x9   :  { %p175_p3 = scmp.ne.s32.totalorder %s16_s13, %s174_s21  ;;  %p180_p5 = scmp.lt.s32.totalorder %s174_s21, %s174_s21 }
   0xb   :  { %p181_p6 = por %p180_p5, %p179_p4 }
   0xd   :  { %p182_p7 = pnand %p181_p6, %p175_p3 }
   0xf   :  { %185 = shalt.err (!%p182_p7)
}
  0x10   :  { %s213_s22 = smov 256   ;;  %s214_s23 = smov 16  }
  0x11   :  { %21 = dma.hbm_to_vmem [thread:$0]  %s302_s0, 512, %s16_s13, [#allocation3], %s213_s22, %s213_s22, %s214_s23  }
  0x12   :  { %208 = dma.done.wait [#allocation3], 512  }
  0x13   :  { %209 = vsyncadd [#allocation3], 4294966784  ;;  %v251_v0 = vld [vmem:[#allocation2] sm:$0xff]  ;;  %v253_v1 = vld [vmem:[#allocation2 + $0x8] sm:$0xff]  ;;  %v98_v40 = vlaneseq }
  0x14   :  { %v255_v2 = vld [vmem:[#allocation2 + $0x10] sm:$0xff]  ;;  %v35_v3 = vadd.f32 %v253_v1, %v251_v0  ;;  %v259_v4 = vld [vmem:[#allocation2 + $0x18] sm:$0xff]  ;;  %v41_v5 = vmul.f32 %v251_v0, %v251_v0  ;;  %v42_v6 = vmul.f32 %v253_v1, %v253_v1  ;;  %v33_v45 = vld [vmem:[%s303_s1] sm:$0x3]  ;;  %s215_s1 = smov [#allocation5]  }
  0x15   :  { %v43_v7 = vmul.f32 %v255_v2, %v255_v2  ;;  %v44_v8 = vmul.f32 %v259_v4, %v259_v4  ;;  %v38_v9 = vadd.f32 %v259_v4, %v255_v2  ;;  %v99_v41 = vshrl.u32 %v98_v40, 7  ;;  %v34_v55 = vld [vmem:[%s304_s2] sm:$0x3]  ;;  %s140_s2 = sshll.u32 %s215_s1, 4  ;;  %s141_s2 = int_to_ptr.vmem [resolvable:$true] %s140_s2 }
  0x16   :  { %36 = vadd.xlane.f32.xlu0 %v35_v3  ;;  %v45_v10 = vadd.f32 %v42_v6, %v41_v5  ;;  %s186_s29 = scalar_lea.vmem %s141_s2, 512  ;;  %p191_p9 = scmp.lt.s32.totalorder %s141_s2, %s141_s2 }
  0x17   :  { %v48_v11 = vadd.f32 %v44_v8, %v43_v7  ;;  %v100_v44 = vsub.s32 0, %v99_v41  ;;  %v104_v46 = vsub.s32 1, %v99_v41  ;;  %p187_p8 = scmp.ne.s32.totalorder %s141_s2, %s186_s29  ;;  %p192_p10 = scmp.lt.s32.totalorder %s186_s29, %s186_s29 }
  0x18   :  { %46 = vadd.xlane.f32.xlu1 %v45_v10 }
  0x19   :  { %v101_v50 = vrot.slane %v33_v45, %v100_v44  ;;  %v105_v52 = vrot.slane %v33_v45, %v104_v46  ;;  %v120_v60 = vrot.slane %v34_v55, %v100_v44  ;;  %v124_v3 = vrot.slane %v34_v55, %v104_v46  ;;  %p193_p11 = por %p192_p10, %p191_p9 }
  0x1a   :  { %39 = vadd.xlane.f32.xlu0 %v38_v9 }
  0x1b   :  { %p194_p12 = pnand %p193_p11, %p187_p8 }
  0x1c   :  { %49 = vadd.xlane.f32.xlu1 %v48_v11 }
  0xa3   :  { %v37_v12 = vpop.xlane.xlu0 %36 }
  0xa4   :  { %v51_v13 = vmul.f32 0.00390625, %v37_v12 }
  0xa5   :  { %v47_v14 = vpop.xlane.xlu1 %46 }
  0xa6   :  { %v53_v15 = vmul.f32 256.0, %v51_v13  ;;  %v93_v53 = vsub.f32 %v251_v0, %v51_v13  ;;  %v94_v54 = vsub.f32 %v253_v1, %v51_v13 }
  0xa7   :  { %v40_v16 = vpop.xlane.xlu0 %39 }
  0xa8   :  { %v271_v17 = vmul.f32 0.00390625, %v40_v16  ;;  %v55_v18 = vmul.f32 %v53_v15, %v51_v13  ;;  %v108_v61 = vmul.f32 %v101_v50, %v93_v53  ;;  %v109_v62 = vmul.f32 %v105_v52, %v94_v54 }
  0xa9   :  { %v50_v21 = vpop.xlane.xlu1 %49 }
  0xaa   :  { %v57_v19 = vsub.f32 %v47_v14, %v55_v18  ;;  %v54_v20 = vmul.f32 256.0, %v271_v17  ;;  %v95_v5 = vsub.f32 %v255_v2, %v271_v17  ;;  %v96_v0 = vsub.f32 %v259_v4, %v271_v17 }
  0xac   :  { %v59_v22 = vmul.f32 0.003921569, %v57_v19  ;;  %v56_v23 = vmul.f32 %v54_v20, %v271_v17  ;;  %v110_v11 = vmul.f32 %v101_v50, %v95_v5  ;;  %v111_v12 = vmul.f32 %v105_v52, %v96_v0 }
  0xae   :  { %v61_v24 = vmax.f32 %v59_v22, 0.0  ;;  %v58_v25 = vsub.f32 %v50_v21, %v56_v23 }
  0xb0   :  { %156 = vrsqrt.f32 %v61_v24  ;;  %v60_v26 = vmul.f32 0.003921569, %v58_v25  ;;  %vm65_vm0 = vcmp.eq.f32.partialorder %v61_v24, inf  ;;  %v68_v30 = vand.u32 2147483648, %v61_v24 }
  0xb1   :  { %vm67_vm1 = vcmp.eq.f32.partialorder %v61_v24, 0.0 }
  0xb2   :  { %v62_v27 = vmax.f32 %v60_v26, 0.0 }
  0xb4   :  { %158 = vrsqrt.f32 %v62_v27  ;;  %vm72_vm2 = vcmp.eq.f32.partialorder %v62_v27, inf  ;;  %v75_v36 = vand.u32 2147483648, %v62_v27  ;;  %vm74_vm3 = vcmp.eq.f32.partialorder %v62_v27, 0.0 }
  0xba   :  { %v157_v28 = vpop.eup %156 }
  0xbb   :  { %v64_v29 = vmul.f32 %v157_v28, %v61_v24 }
  0xbd   :  { %v66_v31 = vsel %vm65_vm0, %v61_v24, %v64_v29 }
  0xbe   :  { %v69_v32 = vsel %vm67_vm1, %v68_v30, %v66_v31  ;;  %v159_v33 = vpop.eup %158 }
  0xbf   :  { %v77_v34 = vadd.f32 1e-06, %v69_v32  ;;  %v71_v35 = vmul.f32 %v159_v33, %v62_v27 }
  0xc1   :  { %160 = vrcp.f32 %v77_v34  ;;  %v73_v37 = vsel %vm72_vm2, %v62_v27, %v71_v35 }
  0xc2   :  { %v76_v38 = vsel %vm74_vm3, %v75_v36, %v73_v37 }
  0xc3   :  { %v78_v39 = vadd.f32 1e-06, %v76_v38 }
  0xc5   :  { %162 = vrcp.f32 %v78_v39 }
  0xcb   :  { %v161_v42 = vpop.eup %160 }
  0xcc   :  { %v81_v43 = vmul.f32 %v161_v42, %v77_v34 }
  0xce   :  { %v83_v47 = vsub.f32 2.0, %v81_v43 }
  0xcf   :  { %v163_v48 = vpop.eup %162 }
  0xd0   :  { %v85_v49 = vmul.f32 %v161_v42, %v83_v47  ;;  %v82_v51 = vmul.f32 %v163_v48, %v78_v39 }
  0xd2   :  { %v87_v56 = vmul.f32 %v85_v49, %v77_v34  ;;  %v84_v57 = vsub.f32 2.0, %v82_v51 }
  0xd4   :  { %v89_v58 = vsub.f32 2.0, %v87_v56  ;;  %v86_v59 = vmul.f32 %v163_v48, %v84_v57 }
  0xd6   :  { %v91_v63 = vmul.f32 %v89_v58, %v85_v49  ;;  %v88_v1 = vmul.f32 %v86_v59, %v78_v39 }
  0xd8   :  { %v112_v6 = vmul.f32 %v108_v61, %v91_v63  ;;  %v113_v7 = vmul.f32 %v109_v62, %v91_v63  ;;  %v90_v8 = vsub.f32 2.0, %v88_v1 }
  0xda   :  { %v127_v9 = vadd.f32 %v120_v60, %v112_v6  ;;  %v128_v10 = vadd.f32 %v124_v3, %v113_v7  ;;  %v92_v13 = vmul.f32 %v90_v8, %v86_v59 }
  0xdc   :  { %131 = vst [vmem:[#allocation5] sm:$0xff] %v127_v9  ;;  %132 = vst [vmem:[#allocation5 + $0x8] sm:$0xff] %v128_v10  ;;  %v114_v14 = vmul.f32 %v110_v11, %v92_v13  ;;  %v115_v15 = vmul.f32 %v111_v12, %v92_v13 }
  0xde   :  { %v129_v16 = vadd.f32 %v120_v60, %v114_v14  ;;  %v130_v2 = vadd.f32 %v124_v3, %v115_v15 }
  0xe0   :  { %133 = vst [vmem:[#allocation5 + $0x10] sm:$0xff] %v129_v16  ;;  %134 = vst [vmem:[#allocation5 + $0x18] sm:$0xff] %v130_v2 }
  0xe1   :  { %197 = shalt.err (!%p194_p12)
}
  0xe2   :  { %s198_s5 = scalar_lea.hbm %s305_s3, 512 }
  0xe3   :  { %p199_p13 = scmp.ne.s32.totalorder %s305_s3, %s198_s5  ;;  %p202_p0 = scmp.lt.u32.totalorder %s198_s5, %s305_s3 }
  0xe5   :  { %p204_p1 = pnand %p202_p0, %p199_p13 }
  0xe7   :  { %207 = shalt.err (!%p204_p1)
}
  0xe8   :  { %146 = dma.vmem_to_hbm [thread:$0]  %s141_s2, 512, %s305_s3, [#allocation4], %s213_s22, %s213_s22, %s214_s23  }
  0xe9   :  { %210 = dma.done.wait [#allocation4], 512  }
  0xea   :  { %211 = vsyncadd [#allocation4], 4294966784 }
  0xeb   :  { %150 = vsyncpa [#allocation3], 1 }
  0xec   :  { %151 = vsyncpa [#allocation4], 1 }

</bundles_post_ra>
